<compile_context>
chip_gen: v6e
topology: v6e:2x2x1
jax: 0.10.0
libtpu: 0.0.40
codegen_flags: <defaults>
</compile_context>

<pallas_src>
import functools

import jax
import jax.numpy as jnp
from jax.experimental import pallas as pl
from jax.experimental.pallas import tpu as pltpu

EPS = 1e-9
LANES = 128


def _pick_tile_rows(num_classes, total_rows, max_rows, vmem_block_budget_bytes):
    """Rows of 128 pixels per tile, sized from a VMEM budget."""
    # Bytes per 128-pixel row at steady state: double-buffered f32 logits
    # (C slabs) + double-buffered int16 targets + the resident f32 accumulator.
    bytes_per_row = 2 * (num_classes * LANES * 4 + LANES * 2) + LANES * 4
    rows = min(max_rows, max(16, vmem_block_budget_bytes // bytes_per_row))
    rows = max(16, (rows // 16) * 16)  # aligned for f32 (8,128) and int16 (16,128)
    return total_rows if rows >= total_rows else rows


def _focal_loss_kernel(x_ref, t_ref, out_ref, *, num_classes, hw, tile_rows,
                       num_tiles, need_mask):
    """One grid step.

    x_ref  : (C, tR, 128) logits  -- classes leading, pixels dense on (sublane, lane)
    t_ref  : (tR, 128) int16 target class ids
    out_ref: (tR, 128) resident per-(batch, split) partial-sum accumulator
    """
    j = pl.program_id(2)

    @pl.when(j == 0)
    def _init():
        out_ref[...] = jnp.zeros_like(out_ref)

    t = t_ref[...].astype(jnp.int32)               # upcast once; compares in 32-bit

    # Running max over the class (leading) axis: C-1 dense elementwise maximums.
    m = x_ref[0].astype(jnp.float32)
    for k in range(1, num_classes):
        m = jnp.maximum(m, x_ref[k].astype(jnp.float32))

    # Softmax denominator + gather-at-target in one unrolled pass over classes.
    sez = jnp.zeros_like(m)
    z_t = jnp.zeros_like(m)
    ez_t = jnp.zeros_like(m)
    for k in range(num_classes):
        zk = x_ref[k].astype(jnp.float32) - m
        ezk = jnp.exp(zk)                          # reused for pt (no extra exp)
        sez = sez + ezk
        mk = t == k
        z_t = jnp.where(mk, zk, z_t)
        ez_t = jnp.where(mk, ezk, ez_t)

    logpt = z_t - jnp.log(sez)                     # log_softmax gathered at target
    pt = jnp.clip(ez_t / sez, EPS, 1.0 - EPS)      # == exp(logpt), no second exp

    # gamma = 5 if pt < 0.2 else 3 ; (1 - pt)**gamma via VPU multiplies + select.
    omp = 1.0 - pt
    w3 = omp * omp * omp
    w5 = w3 * omp * omp
    loss = -jnp.where(pt < 0.2, w5, w3) * logpt    # (tR, 128)

    if need_mask:
        # Only the last real pixel tile (and clamped over-run tiles past it)
        # can contain padded / out-of-range pixels.
        gtile = pl.program_id(1) * pl.num_programs(2) + j
        last = num_tiles - 1

        @pl.when(gtile >= last)
        def _tail():
            row = jax.lax.broadcasted_iota(jnp.int32, loss.shape, 0)
            lane = jax.lax.broadcasted_iota(jnp.int32, loss.shape, 1)
            pix = (gtile * tile_rows + row) * LANES + lane
            out_ref[...] += jnp.where(pix < hw, loss, 0.0)

        @pl.when(gtile < last)
        def _body():
            out_ref[...] += loss
    else:
        out_ref[...] += loss


def focal_loss(x_nchw, target_nhw, *, max_tile_rows=512, split=2,
               vmem_block_budget_bytes=8 * 1024 * 1024):
    """FocalLoss(gamma=None, size_average=False, input_is_softmax=False) -> scalar sum."""
    N, C, H, W = x_nchw.shape
    HW = H * W
    R = pl.cdiv(HW, LANES)                  # pixel rows of 128 lanes
    hw_pad = R * LANES

    # Free reshapes (no transpose).  Lane-pad only when HW is not a multiple
    # of 128 (needed for the dense (R, 128) pixel layout; <= 127 pixels).
    x3 = x_nchw.reshape(N, C, HW)
    t2 = target_nhw.reshape(N, HW).astype(jnp.int16)   # halve target HBM traffic
    if hw_pad != HW:
        x3 = jnp.pad(x3, ((0, 0), (0, 0), (0, hw_pad - HW)))
        t2 = jnp.pad(t2, ((0, 0), (0, hw_pad - HW)))
    x4 = x3.reshape(N, C, R, LANES)
    t3 = t2.reshape(N, R, LANES)

    rows = _pick_tile_rows(C, R, max_tile_rows, vmem_block_budget_bytes)
    tiles = pl.cdiv(R, rows)
    S = split if tiles >= split else 1      # pixel-axis split (v7x dual-TC)
    tps = pl.cdiv(tiles, S)                 # tiles per split

    # Mask only if the last tile has padded pixels or a split over-runs.
    need_mask = (HW != tiles * rows * LANES) or (S * tps != tiles)

    kernel = functools.partial(
        _focal_loss_kernel, num_classes=C, hw=HW, tile_rows=rows,
        num_tiles=tiles, need_mask=need_mask)

    def _row_block(s, j):
        # Clamp the over-run tiles of the last split; they are fully masked.
        return jnp.minimum(s * tps + j, tiles - 1)

    partial_sums = pl.pallas_call(
        kernel,
        out_shape=jax.ShapeDtypeStruct((N, S, rows, LANES), jnp.float32),
        grid_spec=pltpu.PrefetchScalarGridSpec(
            num_scalar_prefetch=0,
            grid=(N, S, tps),
            in_specs=[
                # (C, tR, 128): classes leading, pixels dense on sublanes+lanes.
                pl.BlockSpec((None, C, rows, LANES),
                             lambda n, s, j: (n, 0, _row_block(s, j), 0)),
                # int16 targets, same dense pixel layout.
                pl.BlockSpec((None, rows, LANES),
                             lambda n, s, j: (n, _row_block(s, j), 0)),
            ],
            # Resident partial-sum accumulator per (batch, split).
            out_specs=pl.BlockSpec((None, None, rows, LANES),
                                   lambda n, s, j: (n, s, 0, 0)),
        ),
        compiler_params=pltpu.CompilerParams(
            dimension_semantics=("parallel", "parallel", "arbitrary"),
            vmem_limit_bytes=32 * 1024 * 1024,
        ),
    )(x4, t3)

    # Single tiny reduction of the partial sums to the scalar.
    return jnp.sum(partial_sums)


def focal_loss_ref(x_nchw, target_nhw):
    """Pure-JAX reference mirroring the PyTorch forward (gamma=None, sum)."""
    N, C, H, W = x_nchw.shape
    x2 = jnp.transpose(x_nchw.reshape(N, C, H * W), (0, 2, 1)).reshape(-1, C)
    t = target_nhw.reshape(-1).astype(jnp.int32)
    logp = jax.nn.log_softmax(x2.astype(jnp.float32), axis=1)
    logpt = jnp.take_along_axis(logp, t[:, None], axis=1)[:, 0]
    pt = jnp.clip(jnp.exp(logpt), EPS, 1.0 - EPS)
    gamma = jnp.where(pt < 0.2, 5.0, 3.0)
    return jnp.sum(-((1.0 - pt) ** gamma) * logpt)


if __name__ == "__main__":
    keys = jax.random.split(jax.random.PRNGKey(0), 8)

    cases = [
        # (name, (N, C, H, W), kwargs)
        ("base",         (2, 4, 16, 16), {}),                      # HW % 128 == 0, 1 tile
        ("lane_pad",     (2, 4, 15, 15), {}),                      # HW % 128 != 0 -> pad + mask
        ("split_even",   (1, 4, 64, 64), dict(max_tile_rows=16)),  # 2 tiles, 2-way split, no mask
        ("split_ragged", (1, 4, 72, 72), dict(max_tile_rows=16)),  # 3 tiles, split + clamp + mask
    ]
    for i, (name, (N, C, H, W), kw) in enumerate(cases):
        kx, kt = jax.random.split(keys[i])
        x = jax.random.normal(kx, (N, C, H, W), dtype=jnp.float32)
        tgt = jax.random.randint(kt, (N, H, W), 0, C, dtype=jnp.int32)
        out = jax.block_until_ready(focal_loss(x, tgt, **kw))
        ref = focal_loss_ref(x, tgt)
        assert jnp.allclose(out, ref, rtol=1e-4, atol=1e-3), (name, float(out), float(ref))

    print("KERNEL_OK")
</pallas_src>

<mosaic_0001>
module attributes {stable_mosaic.version = 11 : i64} {
  func.func @_focal_loss_kernel(%arg0: i32, %arg1: i32, %arg2: i32, %arg3: memref<1x4x2x128xf32, #tpu.memory_space<vmem>>, %arg4: memref<1x2x128xi16, #tpu.memory_space<vmem>>, %arg5: memref<1x1x2x128xf32, #tpu.memory_space<vmem>>) attributes {dimension_semantics = [#tpu.dimension_semantics<parallel>, #tpu.dimension_semantics<parallel>, #tpu.dimension_semantics<arbitrary>], iteration_bounds = array<i64: 2, 1, 1>, scalar_prefetch = 0 : i64, scratch_operands = 0 : i64, tpu.core_type = #tpu.core_type<tc>, window_params = [{transform_indices = @transform_0, window_bounds = array<i64: 1, 4, 2, 128>}, {transform_indices = @transform_1, window_bounds = array<i64: 1, 2, 128>}, {transform_indices = @transform_2, window_bounds = array<i64: 1, 1, 2, 128>}]} {
    %c0_i32 = arith.constant 0 : i32
    %0 = arith.cmpi eq, %arg2, %c0_i32 : i32
    %1 = arith.extui %0 : i1 to i32
    %c0_i32_0 = arith.constant 0 : i32
    %2 = arith.cmpi ne, %1, %c0_i32_0 : i32
    scf.if %2 {
      %cst_48 = arith.constant 0.000000e+00 : f32
      %81 = vector.broadcast %cst_48 : f32 to vector<2x128xf32>
      %c0_49 = arith.constant 0 : index
      %c0_50 = arith.constant 0 : index
      %c0_51 = arith.constant 0 : index
      %c0_52 = arith.constant 0 : index
      %82 = vector.load %arg5[%c0_49, %c0_50, %c0_51, %c0_52] : memref<1x1x2x128xf32, #tpu.memory_space<vmem>>, vector<1x1x2x128xf32>
      %83 = vector.shape_cast %82 : vector<1x1x2x128xf32> to vector<2x128xf32>
      %84 = vector.shape_cast %81 : vector<2x128xf32> to vector<1x1x2x128xf32>
      tpu.vector_store %arg5[%c0_49, %c0_50, %c0_51, %c0_52], %84 {strides = array<i32>} : memref<1x1x2x128xf32, #tpu.memory_space<vmem>>, vector<1x1x2x128xf32>,
    } else {
    }
    %c0 = arith.constant 0 : index
    %c0_1 = arith.constant 0 : index
    %c0_2 = arith.constant 0 : index
    %3 = vector.load %arg4[%c0, %c0_1, %c0_2] : memref<1x2x128xi16, #tpu.memory_space<vmem>>, vector<1x2x128xi16>
    %4 = vector.shape_cast %3 : vector<1x2x128xi16> to vector<2x128xi16>
    %5 = arith.extsi %4 : vector<2x128xi16> to vector<2x128xi32>
    %c0_3 = arith.constant 0 : index
    %c0_4 = arith.constant 0 : index
    %c0_5 = arith.constant 0 : index
    %c0_6 = arith.constant 0 : index
    %6 = vector.load %arg3[%c0_3, %c0_4, %c0_5, %c0_6] : memref<1x4x2x128xf32, #tpu.memory_space<vmem>>, vector<1x1x2x128xf32>
    %7 = vector.shape_cast %6 : vector<1x1x2x128xf32> to vector<2x128xf32>
    %c0_7 = arith.constant 0 : index
    %c1 = arith.constant 1 : index
    %c0_8 = arith.constant 0 : index
    %c0_9 = arith.constant 0 : index
    %8 = vector.load %arg3[%c0_7, %c1, %c0_8, %c0_9] : memref<1x4x2x128xf32, #tpu.memory_space<vmem>>, vector<1x1x2x128xf32>
    %9 = vector.shape_cast %8 : vector<1x1x2x128xf32> to vector<2x128xf32>
    %10 = arith.maximumf %7, %9 : vector<2x128xf32>
    %c0_10 = arith.constant 0 : index
    %c2 = arith.constant 2 : index
    %c0_11 = arith.constant 0 : index
    %c0_12 = arith.constant 0 : index
    %11 = vector.load %arg3[%c0_10, %c2, %c0_11, %c0_12] : memref<1x4x2x128xf32, #tpu.memory_space<vmem>>, vector<1x1x2x128xf32>
    %12 = vector.shape_cast %11 : vector<1x1x2x128xf32> to vector<2x128xf32>
    %13 = arith.maximumf %10, %12 : vector<2x128xf32>
    %c0_13 = arith.constant 0 : index
    %c3 = arith.constant 3 : index
    %c0_14 = arith.constant 0 : index
    %c0_15 = arith.constant 0 : index
    %14 = vector.load %arg3[%c0_13, %c3, %c0_14, %c0_15] : memref<1x4x2x128xf32, #tpu.memory_space<vmem>>, vector<1x1x2x128xf32>
    %15 = vector.shape_cast %14 : vector<1x1x2x128xf32> to vector<2x128xf32>
    %16 = arith.maximumf %13, %15 : vector<2x128xf32>
    %cst = arith.constant 0.000000e+00 : f32
    %17 = vector.broadcast %cst : f32 to vector<2x128xf32>
    %cst_16 = arith.constant 0.000000e+00 : f32
    %18 = vector.broadcast %cst_16 : f32 to vector<2x128xf32>
    %cst_17 = arith.constant 0.000000e+00 : f32
    %19 = vector.broadcast %cst_17 : f32 to vector<2x128xf32>
    %c0_18 = arith.constant 0 : index
    %c0_19 = arith.constant 0 : index
    %c0_20 = arith.constant 0 : index
    %c0_21 = arith.constant 0 : index
    %20 = vector.load %arg3[%c0_18, %c0_19, %c0_20, %c0_21] : memref<1x4x2x128xf32, #tpu.memory_space<vmem>>, vector<1x1x2x128xf32>
    %21 = vector.shape_cast %20 : vector<1x1x2x128xf32> to vector<2x128xf32>
    %22 = arith.subf %21, %16 : vector<2x128xf32>
    %23 = math.exp %22 : vector<2x128xf32>
    %24 = arith.addf %17, %23 : vector<2x128xf32>
    %c0_i32_22 = arith.constant 0 : i32
    %25 = vector.broadcast %c0_i32_22 : i32 to vector<2x128xi32>
    %26 = arith.cmpi eq, %5, %25 : vector<2x128xi32>
    %27 = arith.select %26, %22, %18 : vector<2x128xi1>, vector<2x128xf32>
    %28 = arith.select %26, %23, %19 : vector<2x128xi1>, vector<2x128xf32>
    %c0_23 = arith.constant 0 : index
    %c1_24 = arith.constant 1 : index
    %c0_25 = arith.constant 0 : index
    %c0_26 = arith.constant 0 : index
    %29 = vector.load %arg3[%c0_23, %c1_24, %c0_25, %c0_26] : memref<1x4x2x128xf32, #tpu.memory_space<vmem>>, vector<1x1x2x128xf32>
    %30 = vector.shape_cast %29 : vector<1x1x2x128xf32> to vector<2x128xf32>
    %31 = arith.subf %30, %16 : vector<2x128xf32>
    %32 = math.exp %31 : vector<2x128xf32>
    %33 = arith.addf %24, %32 : vector<2x128xf32>
    %c1_i32 = arith.constant 1 : i32
    %34 = vector.broadcast %c1_i32 : i32 to vector<2x128xi32>
    %35 = arith.cmpi eq, %5, %34 : vector<2x128xi32>
    %36 = arith.select %35, %31, %27 : vector<2x128xi1>, vector<2x128xf32>
    %37 = arith.select %35, %32, %28 : vector<2x128xi1>, vector<2x128xf32>
    %c0_27 = arith.constant 0 : index
    %c2_28 = arith.constant 2 : index
    %c0_29 = arith.constant 0 : index
    %c0_30 = arith.constant 0 : index
    %38 = vector.load %arg3[%c0_27, %c2_28, %c0_29, %c0_30] : memref<1x4x2x128xf32, #tpu.memory_space<vmem>>, vector<1x1x2x128xf32>
    %39 = vector.shape_cast %38 : vector<1x1x2x128xf32> to vector<2x128xf32>
    %40 = arith.subf %39, %16 : vector<2x128xf32>
    %41 = math.exp %40 : vector<2x128xf32>
    %42 = arith.addf %33, %41 : vector<2x128xf32>
    %c2_i32 = arith.constant 2 : i32
    %43 = vector.broadcast %c2_i32 : i32 to vector<2x128xi32>
    %44 = arith.cmpi eq, %5, %43 : vector<2x128xi32>
    %45 = arith.select %44, %40, %36 : vector<2x128xi1>, vector<2x128xf32>
    %46 = arith.select %44, %41, %37 : vector<2x128xi1>, vector<2x128xf32>
    %c0_31 = arith.constant 0 : index
    %c3_32 = arith.constant 3 : index
    %c0_33 = arith.constant 0 : index
    %c0_34 = arith.constant 0 : index
    %47 = vector.load %arg3[%c0_31, %c3_32, %c0_33, %c0_34] : memref<1x4x2x128xf32, #tpu.memory_space<vmem>>, vector<1x1x2x128xf32>
    %48 = vector.shape_cast %47 : vector<1x1x2x128xf32> to vector<2x128xf32>
    %49 = arith.subf %48, %16 : vector<2x128xf32>
    %50 = math.exp %49 : vector<2x128xf32>
    %51 = arith.addf %42, %50 : vector<2x128xf32>
    %c3_i32 = arith.constant 3 : i32
    %52 = vector.broadcast %c3_i32 : i32 to vector<2x128xi32>
    %53 = arith.cmpi eq, %5, %52 : vector<2x128xi32>
    %54 = arith.select %53, %49, %45 : vector<2x128xi1>, vector<2x128xf32>
    %55 = arith.select %53, %50, %46 : vector<2x128xi1>, vector<2x128xf32>
    %56 = math.log %51 : vector<2x128xf32>
    %57 = arith.subf %54, %56 : vector<2x128xf32>
    %58 = arith.divf %55, %51 : vector<2x128xf32>
    %cst_35 = arith.constant 9.99999971E-10 : f32
    %cst_36 = arith.constant 1.000000e+00 : f32
    %59 = vector.broadcast %cst_35 : f32 to vector<2x128xf32>
    %60 = arith.maximumf %59, %58 : vector<2x128xf32>
    %61 = vector.broadcast %cst_36 : f32 to vector<2x128xf32>
    %62 = arith.minimumf %61, %60 : vector<2x128xf32>
    %cst_37 = arith.constant 1.000000e+00 : f32
    %63 = vector.broadcast %cst_37 : f32 to vector<2x128xf32>
    %64 = arith.subf %63, %62 : vector<2x128xf32>
    %65 = arith.mulf %64, %64 : vector<2x128xf32>
    %66 = arith.mulf %65, %64 : vector<2x128xf32>
    %67 = arith.mulf %66, %64 : vector<2x128xf32>
    %68 = arith.mulf %67, %64 : vector<2x128xf32>
    %cst_38 = arith.constant 2.000000e-01 : f32
    %69 = vector.broadcast %cst_38 : f32 to vector<2x128xf32>
    %70 = arith.cmpf olt, %62, %69 : vector<2x128xf32>
    %71 = arith.select %70, %68, %66 : vector<2x128xi1>, vector<2x128xf32>
    %cst_39 = arith.constant 0.000000e+00 : f32
    %72 = vector.broadcast %cst_39 : f32 to vector<2x128xf32>
    %73 = arith.subf %72, %71 : vector<2x128xf32>
    %74 = arith.mulf %73, %57 : vector<2x128xf32>
    %c0_40 = arith.constant 0 : index
    %c0_41 = arith.constant 0 : index
    %c0_42 = arith.constant 0 : index
    %c0_43 = arith.constant 0 : index
    %75 = vector.load %arg5[%c0_40, %c0_41, %c0_42, %c0_43] : memref<1x1x2x128xf32, #tpu.memory_space<vmem>>, vector<1x1x2x128xf32>
    %76 = vector.shape_cast %75 : vector<1x1x2x128xf32> to vector<2x128xf32>
    %77 = arith.addf %76, %74 : vector<2x128xf32>
    %c0_44 = arith.constant 0 : index
    %c0_45 = arith.constant 0 : index
    %c0_46 = arith.constant 0 : index
    %c0_47 = arith.constant 0 : index
    %78 = vector.load %arg5[%c0_44, %c0_45, %c0_46, %c0_47] : memref<1x1x2x128xf32, #tpu.memory_space<vmem>>, vector<1x1x2x128xf32>
    %79 = vector.shape_cast %78 : vector<1x1x2x128xf32> to vector<2x128xf32>
    %80 = vector.shape_cast %77 : vector<2x128xf32> to vector<1x1x2x128xf32>
    tpu.vector_store %arg5[%c0_44, %c0_45, %c0_46, %c0_47], %80 {strides = array<i32>} : memref<1x1x2x128xf32, #tpu.memory_space<vmem>>, vector<1x1x2x128xf32>,
    return
  }
  func.func @transform_0(%arg0: i32, %arg1: i32, %arg2: i32) -> (i32, i32, i32, i32) {
    %c1_i32 = arith.constant 1 : i32
    %0 = arith.muli %arg1, %c1_i32 : i32
    %1 = arith.addi %0, %arg2 : i32
    %c0_i32 = arith.constant 0 : i32
    %2 = arith.minsi %1, %c0_i32 : i32
    %c0_i32_0 = arith.constant 0 : i32
    %c0_i32_1 = arith.constant 0 : i32
    %c0_i32_2 = arith.constant 0 : i32
    return %arg0, %c0_i32_0, %2, %c0_i32_1 : i32, i32, i32, i32
  }
  func.func @transform_1(%arg0: i32, %arg1: i32, %arg2: i32) -> (i32, i32, i32) {
    %c1_i32 = arith.constant 1 : i32
    %0 = arith.muli %arg1, %c1_i32 : i32
    %1 = arith.addi %0, %arg2 : i32
    %c0_i32 = arith.constant 0 : i32
    %2 = arith.minsi %1, %c0_i32 : i32
    %c0_i32_0 = arith.constant 0 : i32
    %c0_i32_1 = arith.constant 0 : i32
    return %arg0, %2, %c0_i32_0 : i32, i32, i32
  }
  func.func @transform_2(%arg0: i32, %arg1: i32, %arg2: i32) -> (i32, i32, i32, i32) {
    %c0_i32 = arith.constant 0 : i32
    %c0_i32_0 = arith.constant 0 : i32
    %c0_i32_1 = arith.constant 0 : i32
    return %arg0, %arg1, %c0_i32, %c0_i32_0 : i32, i32, i32, i32
  }
}

</mosaic_0001>

<bundles_post_ra>
// kernel: tpu_custom_call.1
= control target key start
LH: loop header
LB: loop body
LE: loop exit
PB: predicated region body
PF: predicated region fallthrough
CT: control target
= control target key end

     0   :  { %7 = vsyncpa [#allocation3], 0  ;;  %s864_s0 = inlined_call_operand.hbm [shape: f32[2,4,2,128], index: 0, kind: input, shape index: {}]   ;;  %s865_s1 = inlined_call_operand.hbm [shape: s16[2,2,128], index: 1, kind: input, shape index: {}]   ;;  %s866_s2 = inlined_call_operand.hbm [shape: f32[2,1,2,128], index: 2, kind: output, shape index: {}]  }
   0x1   :  { %9 = vsyncpa [#allocation3 + $0x1], 0 }
   0x2   :  { %10 = vsyncpa [#allocation6], 0 }
   0x3   :  { %12 = vsyncpa [#allocation6 + $0x1], 0 }
   0x4   :  { %13 = vsyncpa [#allocation4], 0 }
   0x5   :  { %15 = vsyncpa [#allocation4 + $0x1], 0  ;;  %s695_s9 = smov 0   ;;  %s697_s10 = smov 0  }
   0x6   :  { %s699_s11 = smov 0   ;;  %s701_s12 = smov 0  }
   0x7   :  { %s703_s13 = smov 0   ;;  %s705_s14 = smov 0  }
   0x8 LB: > { %s431_s15 = sadd.s32 4294967295, %s672_s14   ;;  %s432_s16 = sadd.s32 4294967294, %s672_s14   ;;  %s672_s14 = sphi %s705_s14, %s21_s14   ;;  %s668_s13 = sphi %s703_s13, %s878_s13   ;;  %s664_s12 = sphi %s701_s12, %s877_s12   ;;  %s660_s11 = sphi %s699_s11, %s876_s11   ;;  %s656_s10 = sphi %s697_s10, %s875_s10   ;;  %s652_s9 = sphi %s695_s9, %s874_s9  }
   0x9   : > { %s40_s17 = sadd.s32 1, %s668_s13  ;;  %s55_s18 = sadd.s32 1, %s660_s11 }
   0xa   : > { %p42_p0 = scmp.ge.s32.totalorder %s40_s17, 2  ;;  %p62_p1 = scmp.ne.s32.totalorder %s660_s11, %s656_s10 }
   0xb   : > { %p63_p2 = scmp.eq.s32.totalorder %s672_s14, 0  ;;  %p68_p3 = scmp.ne.s32.totalorder %s656_s10, %s652_s9 }
   0xc   : > { %s880_s17 = smov (%p42_p0, %s40_s17), 0  ;;  %p69_p5 = scmp.eq.s32.totalorder %s431_s15, 0 }
   0xd   : > { %p736_p4 = por %p63_p2, %p62_p1  ;;  %s50_s20 = ssub.s32 %s668_s13, %s880_s17 }
   0xe   : > { %p128_p6 = scmp.eq.s32.totalorder %s431_s15, 1  ;;  %p53_p7 = scmp.eq.s32.totalorder %s50_s20, 0 }
   0xf   : > { %p742_p8 = por %p69_p5, %p68_p3  ;;  %p134_p10 = scmp.eq.s32.totalorder %s432_s16, 1 }
  0x10   : > { %p746_p9 = por %p128_p6, %p62_p1  ;;  %p467_p13 = scmp.lt.s32.totalorder %s672_s14, 2 }
  0x11   : > { %s751_s23 = scalar_select %p53_p7, %s660_s11, %s55_s18  }
  0x12   : > { %p753_p11 = por %p134_p10, %p68_p3  ;;  %s760_s25 = sand.u32 1, %s660_s11  }
  0x13   : > { %s435_s26 = sshll.u32 %s760_s25, 3  ;;  %s449_s27 = sshll.u32 %s668_s13, 7 }
  0x14   : > { %s168_s30 = scalar_lea.hbm %s864_s0, %s449_s27  ;;  %s158_s3 = scalar_lea.vmem [#allocation2], %s435_s26 }
  0x15   : > { %s169_s4 = sshll.u32 %s158_s3, 4  ;;  %p769_p0 = pnand %p467_p13, %p736_p4  ;;  %s170_s4 = int_to_ptr.vmem [resolvable:$true] %s169_s4 }
  0x16   : > { %p439_p1 = scmp.ge.s32.totalorder %s672_s14, 1  ;;  %s155_s6 = scalar_lea.sflag [#allocation3], %s760_s25 }
  0x17   : > { %p534_p2 = pneg %p769_p0  ;;  %s545_s7 = scalar_lea.vmem %s170_s4, 128 }
  0x18   : > { %p546_p3 = scmp.ne.s32.totalorder %s170_s4, %s545_s7  ;;  %s674_s8 = smov [#allocation2]  }
  0x19   : > { %s550_s15 = sshll.u32 %s674_s8, 4  ;;  %s551_s15 = int_to_ptr.vmem [resolvable:$false] %s550_s15 }
  0x1a   : > { %p548_p5 = pnand %p546_p3, %p534_p2  ;;  %s552_s16 = scalar_lea.vmem %s551_s15, 256 }
  0x1b   : > { %p553_p4 = scmp.lt.s32.totalorder %s170_s4, %s551_s15  ;;  %p554_p7 = scmp.lt.s32.totalorder %s552_s16, %s545_s7 }
  0x1c   : > { %p549_p6 = pneg %p548_p5 }
  0x1d   : > { %p555_p10 = por %p554_p7, %p553_p4 }
  0x1f   : > { %p556_p13 = pnand %p555_p10, %p549_p6 }
  0x21   : > { %559 = shalt.err (!%p556_p13)
}
  0x22   : > { %s675_s18 = smov 32   ;;  %s676_s19 = smov 2  }
  0x23   : > { %459 = dma.hbm_to_vmem [thread:$0]  (!%p769_p0), %s168_s30, 128, %s170_s4, %s155_s6, %s675_s18, %s675_s18, %s676_s19  }
  0x24   : > { %p198_p3 = scmp.lt.s32.totalorder %s672_s14, 3  ;;  %s438_s20 = sshll.u32 %s668_s13, 4 }
  0x25   : > { %s191_s29 = scalar_lea.hbm %s865_s1, %s438_s20  ;;  %s182_s3 = scalar_lea.vmem [#allocation5], %s760_s25 }
  0x26   : > { %p786_p5 = pnand %p439_p1, %p198_p3  ;;  %s193_s7 = sshll.u32 %s182_s3, 4  ;;  %s194_s7 = int_to_ptr.vmem [resolvable:$true] %s193_s7 }
  0x27   : > { %s180_s8 = scalar_lea.sflag [#allocation6], %s760_s25  ;;  %s573_s15 = scalar_lea.vmem %s194_s7, 16 }
  0x28   : > { %p574_p6 = scmp.ne.s32.totalorder %s194_s7, %s573_s15  ;;  %s677_s30 = smov [#allocation5]  }
  0x29   : > { %s578_s4 = sshll.u32 %s677_s30, 4  ;;  %s579_s4 = int_to_ptr.vmem [resolvable:$false] %s578_s4 }
  0x2a   : > { %p576_p4 = pnand %p574_p6, %p534_p2  ;;  %s580_s6 = scalar_lea.vmem %s579_s4, 32 }
  0x2b   : > { %p581_p1 = scmp.lt.s32.totalorder %s194_s7, %s579_s4  ;;  %p582_p10 = scmp.lt.s32.totalorder %s580_s6, %s573_s15 }
  0x2c   : > { %p577_p7 = pneg %p576_p4 }
  0x2d   : > { %p583_p13 = por %p582_p10, %p581_p1 }
  0x2f   : > { %p584_p3 = pnand %p583_p13, %p577_p7 }
  0x31   : > { %587 = shalt.err (!%p584_p3)
}
  0x32   : > { %462 = dma.hbm_to_vmem [thread:$0]  (!%p769_p0), %s191_s29, 16, %s194_s7, %s180_s8  }
  0x33   : > { %202 = sbr.rel (%p786_p5) target bundleno = 142 (0x8e), region = 28  ;;  %s803_s25 = sand.u32 (!%p786_p5), 1, %s656_s10  }
  0x34   : > { %s440_s16 = sshll.u32 (!%p786_p5), %s803_s25, 3  ;;  %s205_s18 = scalar_lea.sflag (!%p786_p5), [#allocation3], %s803_s25 }
  0x35   : > { %s208_s19 = scalar_lea.vmem (!%p786_p5), [#allocation2], %s440_s16 }
  0x38   : > { %639 = dma.done.wait (%p742_p8), %s205_s18, 128  }
  0x39   : > { %641 = vsyncadd (%p742_p8), %s205_s18, 4294967168  ;;  %s214_s5 = scalar_lea.sflag [#allocation6], %s803_s25  ;;  %s216_s20 = scalar_lea.vmem [#allocation5], %s803_s25 }
  0x3a   : > { %643 = dma.done.wait (%p742_p8), %s214_s5, 16  }
  0x3b   : > { %645 = vsyncadd (%p742_p8), %s214_s5, 4294967280  ;;  %s441_s26 = sshll.u32 %s803_s25, 1  ;;  %v678_v0 = vmov 0.0   ;;  %v254_v1 = vld [vmem:[%s208_s19] sm:$0x3]  ;;  %s446_s21 = sshll.u32 %s664_s12, 5 }
  0x3c   : > { %s818_s27 = scalar_lea.vmem [#allocation7], %s441_s26  ;;  %v442_v2 = vld [vmem:[%s208_s19 + $0x2] sm:$0x3]  ;;  %v443_v4 = vld [vmem:[%s208_s19 + $0x4] sm:$0x3]  ;;  %s324_s7 = scalar_lea.hbm %s866_s2, %s446_s21 }
  0x3d   : > { %251 = vst [vmem:[%s818_s27] sm:$0x3] %v678_v0  ;;  %v257_v3 = vmax.f32 %v254_v1, %v442_v2  ;;  %v444_v5 = vld [vmem:[%s208_s19 + $0x6] sm:$0x3]  ;;  %v252_v18 = vld [vmem:[%s216_s20] sm:$0x1]  ;;  %s326_s28 = sshll.u32 %s818_s27, 4  ;;  %s327_s28 = int_to_ptr.vmem [resolvable:$true] %s326_s28 }
  0x3e   : > { %v253_v22 = vunpack.c.l.b16 %v252_v18  ;;  %s312_s8 = scalar_lea.sflag [#allocation4], %s803_s25  ;;  %s588_s15 = scalar_lea.vmem %s327_s28, 32 }
  0x3f   : > { %v260_v6 = vmax.f32 %v257_v3, %v443_v4  ;;  %p589_p8 = scmp.ne.s32.totalorder %s327_s28, %s588_s15  ;;  %s679_s30 = smov [#allocation7]  }
  0x40   : > { %vm268_vm0 = vcmp.eq.s32.totalorder %v253_v22, 0  ;;  %vm275_vm1 = vcmp.eq.s32.totalorder %v253_v22, 1  ;;  %vm282_vm2 = vcmp.eq.s32.totalorder %v253_v22, 2  ;;  %vm289_vm3 = vcmp.eq.s32.totalorder %v253_v22, 3  ;;  %s592_s4 = sshll.u32 %s679_s30, 4  ;;  %s593_s4 = int_to_ptr.vmem [resolvable:$false] %s592_s4 }
  0x41   : > { %v263_v7 = vmax.f32 %v260_v6, %v444_v5  ;;  %p590_p0 = pnand %p589_p8, %p746_p9  ;;  %s594_s6 = scalar_lea.vmem %s593_s4, 64 }
  0x42   : > { %p595_p5 = scmp.lt.s32.totalorder %s327_s28, %s593_s4  ;;  %p596_p6 = scmp.lt.s32.totalorder %s594_s6, %s588_s15 }
  0x43   : > { %v264_v8 = vsub.f32 %v254_v1, %v263_v7  ;;  %v271_v9 = vsub.f32 %v442_v2, %v263_v7  ;;  %v278_v10 = vsub.f32 %v443_v4, %v263_v7  ;;  %v285_v11 = vsub.f32 %v444_v5, %v263_v7  ;;  %p591_p2 = pneg %p590_p0 }
  0x44   : > { %v308_v47 = vld [vmem:[%s818_s27] sm:$0x3]  ;;  %p597_p4 = por %p596_p6, %p595_p5 }
  0x45   : > { %v265_v12 = vmul.f32 1.442695, %v264_v8  ;;  %v272_v13 = vmul.f32 1.442695, %v271_v9  ;;  %v279_v14 = vmul.f32 1.442695, %v278_v10 }
  0x46   : > { %v286_v15 = vmul.f32 1.442695, %v285_v11  ;;  %v269_v32 = vsel %vm268_vm0, %v264_v8, 0.0  ;;  %p598_p7 = pnand %p597_p4, %p591_p2 }
  0x47   : > { %520 = vpow2.f32 %v265_v12  ;;  %v276_v34 = vsel %vm275_vm1, %v271_v9, %v269_v32 }
  0x48   : > { %522 = vpow2.f32 %v272_v13  ;;  %v283_v38 = vsel %vm282_vm2, %v278_v10, %v276_v34 }
  0x49   : > { %524 = vpow2.f32 %v279_v14  ;;  %v290_v41 = vsel %vm289_vm3, %v285_v11, %v283_v38 }
  0x4a   : > { %526 = vpow2.f32 %v286_v15 }
  0x54   : > { %v521_v16 = vpop.eup %520 }
  0x55   : > { %v523_v17 = vpop.eup %522  ;;  %v270_v25 = vsel %vm268_vm0, %v521_v16, 0.0 }
  0x56   : > { %v525_v19 = vpop.eup %524  ;;  %v274_v20 = vadd.f32 %v523_v17, %v521_v16  ;;  %v277_v26 = vsel %vm275_vm1, %v523_v17, %v270_v25 }
  0x57   : > { %v527_v21 = vpop.eup %526  ;;  %v284_v27 = vsel %vm282_vm2, %v525_v19, %v277_v26 }
  0x58   : > { %v281_v23 = vadd.f32 %v525_v19, %v274_v20  ;;  %v291_v28 = vsel %vm289_vm3, %v527_v21, %v284_v27 }
  0x5a   : > { %v288_v24 = vadd.f32 %v527_v21, %v281_v23 }
  0x5c   : > { %528 = vrcp.f32 %v288_v24 }
  0x5d   : > { %530 = vlog2.f32 %v288_v24 }
  0x69   : > { %v529_v29 = vpop.eup %528 }
  0x6a   : > { %v296_v30 = vmul.f32 %v529_v29, %v291_v28  ;;  %v531_v36 = vpop.eup %530 }
  0x6b   : > { %v293_v40 = vmul.f32 0.6931472, %v531_v36 }
  0x6c   : > { %v297_v31 = vmax.f32 %v296_v30, 1e-09 }
  0x6d   : > { %v294_v44 = vsub.f32 %v290_v41, %v293_v40 }
  0x6e   : > { %v298_v33 = vmin.f32 %v297_v31, 1.0 }
  0x70   : > { %v299_v35 = vsub.f32 1.0, %v298_v33  ;;  %vm304_vm4 = vcmp.lt.f32.partialorder %v298_v33, 0.2 }
  0x72   : > { %v300_v37 = vmul.f32 %v299_v35, %v299_v35 }
  0x74   : > { %v301_v39 = vmul.f32 %v300_v37, %v299_v35 }
  0x76   : > { %v302_v42 = vmul.f32 %v301_v39, %v299_v35 }
  0x78   : > { %v303_v43 = vmul.f32 %v302_v42, %v299_v35 }
  0x7a   : > { %v305_v45 = vsel %vm304_vm4, %v303_v43, %v301_v39 }
  0x7b   : > { %v306_v46 = vsub.f32 0.0, %v305_v45 }
  0x7d   : > { %v307_v48 = vmul.f32 %v306_v46, %v294_v44 }
  0x7f   : > { %v309_v49 = vadd.f32 %v308_v47, %v307_v48 }
  0x81   : > { %310 = vst [vmem:[%s818_s27] sm:$0x3] %v309_v49 }
  0x82   : > { %601 = shalt.err (!%p598_p7)
}
  0x83   : > { %s602_s12 = scalar_lea.hbm %s324_s7, 32  ;;  %s606_s18 = scalar_lea.hbm %s866_s2, 64 }
  0x84   : > { %p603_p1 = scmp.ne.s32.totalorder %s324_s7, %s602_s12  ;;  %p607_p3 = scmp.lt.s32.totalorder %s324_s7, %s866_s2 }
  0x85   : > { %p608_p8 = scmp.lt.s32.totalorder %s606_s18, %s602_s12 }
  0x86   : > { %p604_p10 = pnand %p603_p1, %p746_p9 }
  0x87   : > { %p609_p0 = por %p608_p8, %p607_p3 }
  0x88   : > { %p605_p13 = pneg %p604_p10 }
  0x8a   : > { %p610_p12 = pnand %p609_p0, %p605_p13 }
  0x8c   : > { %613 = shalt.err (!%p610_p12)
}
  0x8d   : > { %454 = dma.vmem_to_hbm [thread:$0]  (%p746_p9), %s327_s28, 32, %s324_s7, %s312_s8  }
  0x8e PF: > { %s338_s20 = sand.u32 1, %s652_s9   ;;  %p873_p2 = scmp.ge.s32.totalorder %s672_s14, 2 }
  0x8f   : > { %s339_s26 = scalar_lea.sflag [#allocation4], %s338_s20 }
  0x90   : > { %p464_p5 = pnand %p873_p2, %p753_p11 }
  0x92   : > { %p465_p6 = pneg %p464_p5 }
  0x94   : > { %647 = dma.done.wait (%p465_p6), %s339_s26, 32  }
  0x95   : > { %649 = vsyncadd (%p465_p6), %s339_s26, 4294967264  ;;  %s21_s14 = sadd.s32 1, %s672_s14   ;;  %s874_s9 = smov %s656_s10 }
  0x96   : > { %p18_p4 = scmp.ge.s32.totalorder %s21_s14, 4   ;;  %s875_s10 = smov %s660_s11 }
  0x97   : > { %s876_s11 = smov %s751_s23  ;;  %s877_s12 = smov %s668_s13 }
  0x98   : > { %s878_s13 = smov %s880_s17  ;;  %20 = sbr.rel (!%p18_p4) target bundleno = 8 (0x8), region = 93 }
  0x9d   :  { %344 = vsyncpa [#allocation3], 1 }
  0x9e   :  { %346 = vsyncpa [#allocation3 + $0x1], 1 }
  0x9f   :  { %347 = vsyncpa [#allocation6], 1 }
  0xa0   :  { %349 = vsyncpa [#allocation6 + $0x1], 1 }
  0xa1   :  { %350 = vsyncpa [#allocation4], 1 }
  0xa2   :  { %352 = vsyncpa [#allocation4 + $0x1], 1 }

</bundles_post_ra>
